<compile_context>
chip_gen: v7x
topology: tpu7x:2x2x1
jax: 0.10.0
libtpu: 0.0.40
codegen_flags: <defaults>
</compile_context>

<pallas_src>
import functools

import jax
import jax.numpy as jnp
from jax.experimental import pallas as pl
from jax.experimental.pallas import tpu as pltpu


# ----------------------------------------------------------------------------
# Kernels
# ----------------------------------------------------------------------------
def _minmax_norm_kernel(x_ref, o_ref, *, eps):
    """Single-pass kernel: one (bb, R, C) tile == bb whole batch rows."""
    xr = x_ref[...]
    # Names follow the PyTorch code (they are intentionally swapped there).
    min_ = jnp.max(xr, axis=(-2, -1), keepdims=True).astype(jnp.float32)  # amax
    max_ = jnp.min(xr, axis=(-2, -1), keepdims=True).astype(jnp.float32)  # amin
    # One exact reciprocal per batch row, then a single VPU multiply over the
    # tile (elementwise math in f32, cast back to the input dtype).
    inv = pl.reciprocal(max_ - min_ + eps, approx=False)
    o_ref[...] = ((x_ref[...].astype(jnp.float32) - min_) * inv).astype(o_ref.dtype)


def _minmax_stats_kernel(x_ref, mx_ref, mn_ref, *, rows, row_chunk):
    """Two-pass fallback, pass 1: running per-batch-row min/max over R-chunks."""
    r = pl.program_id(1)
    xr = x_ref[...]  # (1, row_chunk, C)
    # Mask rows of a partial final chunk (padded block contents are undefined).
    row_idx = jax.lax.broadcasted_iota(jnp.int32, xr.shape, 1)
    valid = (r * row_chunk + row_idx) < rows
    big = jnp.array(jnp.inf, xr.dtype)
    cur_max = jnp.max(jnp.where(valid, xr, -big), axis=(-2, -1),
                      keepdims=True).astype(jnp.float32)
    cur_min = jnp.min(jnp.where(valid, xr, big), axis=(-2, -1),
                      keepdims=True).astype(jnp.float32)

    @pl.when(r == 0)
    def _():
        mx_ref[...] = cur_max
        mn_ref[...] = cur_min

    @pl.when(r > 0)
    def _():
        mx_ref[...] = jnp.maximum(mx_ref[...], cur_max)
        mn_ref[...] = jnp.minimum(mn_ref[...], cur_min)


def _minmax_apply_kernel(x_ref, mx_ref, mn_ref, o_ref, *, eps):
    """Two-pass fallback, pass 2: elementwise normalize with per-batch stats."""
    min_ = mx_ref[...]  # amax (swapped naming in the torch module)
    max_ = mn_ref[...]  # amin
    inv = pl.reciprocal(max_ - min_ + eps, approx=False)
    o_ref[...] = ((x_ref[...].astype(jnp.float32) - min_) * inv).astype(o_ref.dtype)


# ----------------------------------------------------------------------------
# Wrapper
# ----------------------------------------------------------------------------
def _round_up(v, m):
    return -(-v // m) * m


def min_max_norm(x, eps=1e-6, *, _force_two_pass=False, _row_chunk=None):
    """Pallas TPU implementation of MinMaxNorm.forward for (B, F, T) inputs."""
    B, F, T = x.shape
    N = F * T
    itemsize = jnp.dtype(x.dtype).itemsize

    # Layout that is dense in BOTH sublanes and lanes.
    if N % 128 == 0:
        R, C = N // 128, 128
    else:
        R, C = F, T
    xw = x.reshape(B, R, C)

    # Generation-aware VMEM budget (v5e/v6e: 128 MiB, v7x: 64 MiB per TC).
    try:
        vmem_cap = int(pltpu.get_tpu_info().vmem_capacity_bytes)
    except Exception:
        vmem_cap = 64 * 1024 * 1024  # conservative (v7x-sized) default
    budget = (vmem_cap * 3) // 8       # ~48 MiB on 128 MiB chips, ~24 MiB on v7x
    vmem_limit = vmem_cap // 2         # 64 MiB on v5e/v6e, 32 MiB on v7x
    is_v7x_like = vmem_cap <= 64 * 1024 * 1024

    # Mosaic-padding-aware per-batch-row accounting.
    sublane = max(8, 8 * (4 // itemsize))      # f32:8, bf16:16, int8/fp8:32
    pr = _round_up(R, sublane)
    pc = _round_up(C, 128)
    tile_bytes = pr * pc * itemsize
    # 2x input + 2x output double-buffering + ~one f32 temp tile of headroom.
    per_row_bytes = 4 * tile_bytes + pr * pc * 4
    bb = budget // per_row_bytes

    if bb >= 1 and not _force_two_pass:
        # ------------------ single-pass path (whole rows fit) ------------------
        bb = int(min(bb, B))
        if is_v7x_like and B >= 2:
            # Keep >= 2 grid steps so both v7x TensorCores get work.
            bb = min(bb, pl.cdiv(B, 2))
        # Prefer a bb that divides B (avoids a padded final batch block).
        if B % bb != 0:
            for cand in range(bb, max(bb // 2, 1) - 1, -1):
                if B % cand == 0:
                    bb = cand
                    break
        assert bb * per_row_bytes <= vmem_limit, "block exceeds VMEM limit"

        out = pl.pallas_call(
            functools.partial(_minmax_norm_kernel, eps=eps),
            out_shape=jax.ShapeDtypeStruct((B, R, C), x.dtype),
            grid=(pl.cdiv(B, bb),),
            in_specs=[pl.BlockSpec((bb, R, C), lambda b: (b, 0, 0))],
            out_specs=pl.BlockSpec((bb, R, C), lambda b: (b, 0, 0)),
            compiler_params=pltpu.CompilerParams(
                dimension_semantics=("parallel",),
                vmem_limit_bytes=vmem_limit,
            ),
        )(xw)
        return out.reshape(B, F, T)

    # ---------------- two-pass fallback (row larger than budget) ----------------
    if _row_chunk is not None:
        rc = int(_row_chunk)
        rc = max(sublane, _round_up(rc, sublane))
    else:
        rc = budget // (pc * (4 * itemsize + 4))
        rc = max(sublane, (rc // sublane) * sublane)
    rc = min(rc, _round_up(R, sublane))
    nrc = pl.cdiv(R, rc)
    chunk_bytes = rc * pc * (4 * itemsize + 4)
    assert chunk_bytes <= vmem_limit, "row chunk exceeds VMEM limit"

    # Pass 1: per-batch min / max (f32, shape (B, 1, 1) each).
    mx, mn = pl.pallas_call(
        functools.partial(_minmax_stats_kernel, rows=R, row_chunk=rc),
        out_shape=(jax.ShapeDtypeStruct((B, 1, 1), jnp.float32),
                   jax.ShapeDtypeStruct((B, 1, 1), jnp.float32)),
        grid=(B, nrc),
        in_specs=[pl.BlockSpec((1, rc, C), lambda b, r: (b, r, 0))],
        out_specs=(pl.BlockSpec((1, 1, 1), lambda b, r: (b, 0, 0)),
                   pl.BlockSpec((1, 1, 1), lambda b, r: (b, 0, 0))),
        compiler_params=pltpu.CompilerParams(
            dimension_semantics=("parallel", "arbitrary"),
            vmem_limit_bytes=vmem_limit,
        ),
    )(xw)

    # Pass 2: elementwise normalize with the per-batch stats broadcast.
    out = pl.pallas_call(
        functools.partial(_minmax_apply_kernel, eps=eps),
        out_shape=jax.ShapeDtypeStruct((B, R, C), x.dtype),
        grid=(B, nrc),
        in_specs=[pl.BlockSpec((1, rc, C), lambda b, r: (b, r, 0)),
                  pl.BlockSpec((1, 1, 1), lambda b, r: (b, 0, 0)),
                  pl.BlockSpec((1, 1, 1), lambda b, r: (b, 0, 0))],
        out_specs=pl.BlockSpec((1, rc, C), lambda b, r: (b, r, 0)),
        compiler_params=pltpu.CompilerParams(
            dimension_semantics=("parallel", "parallel"),
            vmem_limit_bytes=vmem_limit,
        ),
    )(xw, mx, mn)
    return out.reshape(B, F, T)


# ----------------------------------------------------------------------------
# Reference & tests
# ----------------------------------------------------------------------------
def _reference(x, eps=1e-6):
    mx = jnp.max(x, axis=(1, 2), keepdims=True)
    mn = jnp.min(x, axis=(1, 2), keepdims=True)
    return (x - mx) / (mn - mx + eps)


if __name__ == "__main__":
    key = jax.random.PRNGKey(0)
    k1, k2, k3 = jax.random.split(key, 3)

    # Case 1: lane-aligned spectrogram (N % 128 == 0 -> (B, N/128, 128) layout).
    x1 = jax.random.normal(k1, (2, 16, 128), dtype=jnp.float32)
    out1 = jax.block_until_ready(min_max_norm(x1, eps=1e-6))
    assert jnp.allclose(out1, _reference(x1, eps=1e-6), atol=1e-5, rtol=1e-5), \
        "mismatch vs reference (case 1)"

    # Case 2: odd batch, T not a multiple of 128 -> natural (B, F, T) block.
    x2 = jax.random.normal(k2, (3, 16, 100), dtype=jnp.float32)
    out2 = jax.block_until_ready(min_max_norm(x2, eps=1e-6))
    assert jnp.allclose(out2, _reference(x2, eps=1e-6), atol=1e-5, rtol=1e-5), \
        "mismatch vs reference (case 2)"

    # Case 3: exercise the two-pass (chunked-row) fallback, including a masked
    # partial final chunk (20 rows, chunk of 8).
    x3 = jax.random.normal(k3, (2, 20, 100), dtype=jnp.float32)
    out3 = jax.block_until_ready(
        min_max_norm(x3, eps=1e-6, _force_two_pass=True, _row_chunk=8))
    assert jnp.allclose(out3, _reference(x3, eps=1e-6), atol=1e-5, rtol=1e-5), \
        "mismatch vs reference (case 3)"

    print("KERNEL_OK")
</pallas_src>

<mosaic_0001>
module attributes {stable_mosaic.version = 11 : i64} {
  func.func @_minmax_norm_kernel(%arg0: i32, %arg1: memref<1x16x128xf32, #tpu.memory_space<vmem>>, %arg2: memref<1x16x128xf32, #tpu.memory_space<vmem>>) attributes {dimension_semantics = [#tpu.dimension_semantics<parallel>], iteration_bounds = array<i64: 2>, scalar_prefetch = 0 : i64, scratch_operands = 0 : i64, tpu.core_type = #tpu.core_type<tc>, window_params = [{transform_indices = @transform_0, window_bounds = array<i64: 1, 16, 128>}, {transform_indices = @transform_1, window_bounds = array<i64: 1, 16, 128>}]} {
    %c0 = arith.constant 0 : index
    %c0_0 = arith.constant 0 : index
    %c0_1 = arith.constant 0 : index
    %0 = vector.load %arg1[%c0, %c0_0, %c0_1] : memref<1x16x128xf32, #tpu.memory_space<vmem>>, vector<1x16x128xf32>
    %cst = arith.constant dense<0xFF800000> : vector<1xf32>
    %1 = vector.multi_reduction <maximumf>, %0, %cst [1, 2] : vector<1x16x128xf32> to vector<1xf32>
    %2 = vector.shape_cast %1 : vector<1xf32> to vector<1x1x1xf32>
    %cst_2 = arith.constant dense<0x7F800000> : vector<1xf32>
    %3 = vector.multi_reduction <minimumf>, %0, %cst_2 [1, 2] : vector<1x16x128xf32> to vector<1xf32>
    %4 = vector.shape_cast %3 : vector<1xf32> to vector<1x1x1xf32>
    %5 = arith.subf %4, %2 : vector<1x1x1xf32>
    %cst_3 = arith.constant 9.99999997E-7 : f32
    %6 = vector.broadcast %cst_3 : f32 to vector<1x1x1xf32>
    %7 = arith.addf %5, %6 : vector<1x1x1xf32>
    %8 = tpu.reciprocal %7 : vector<1x1x1xf32> -> vector<1x1x1xf32>
    %c0_4 = arith.constant 0 : index
    %c0_5 = arith.constant 0 : index
    %c0_6 = arith.constant 0 : index
    %9 = vector.load %arg1[%c0_4, %c0_5, %c0_6] : memref<1x16x128xf32, #tpu.memory_space<vmem>>, vector<1x16x128xf32>
    %10 = vector.broadcast %2 : vector<1x1x1xf32> to vector<1x16x128xf32>
    %11 = arith.subf %9, %10 : vector<1x16x128xf32>
    %12 = vector.broadcast %8 : vector<1x1x1xf32> to vector<1x16x128xf32>
    %13 = arith.mulf %11, %12 : vector<1x16x128xf32>
    %c0_7 = arith.constant 0 : index
    %c0_8 = arith.constant 0 : index
    %c0_9 = arith.constant 0 : index
    %14 = vector.load %arg2[%c0_7, %c0_8, %c0_9] : memref<1x16x128xf32, #tpu.memory_space<vmem>>, vector<1x16x128xf32>
    tpu.vector_store %arg2[%c0_7, %c0_8, %c0_9], %13 {strides = array<i32>} : memref<1x16x128xf32, #tpu.memory_space<vmem>>, vector<1x16x128xf32>,
    return
  }
  func.func @transform_0(%arg0: i32) -> (i32, i32, i32) {
    %c0_i32 = arith.constant 0 : i32
    %c0_i32_0 = arith.constant 0 : i32
    %c0_i32_1 = arith.constant 0 : i32
    return %arg0, %c0_i32, %c0_i32_0 : i32, i32, i32
  }
  func.func @transform_1(%arg0: i32) -> (i32, i32, i32) {
    %c0_i32 = arith.constant 0 : i32
    %c0_i32_0 = arith.constant 0 : i32
    %c0_i32_1 = arith.constant 0 : i32
    return %arg0, %c0_i32, %c0_i32_0 : i32, i32, i32
  }
}

</mosaic_0001>

<bundles_post_ra>
// kernel: tpu_custom_call.1
= control target key start
LH: loop header
LB: loop body
LE: loop exit
PB: predicated region body
PF: predicated region fallthrough
CT: control target
= control target key end

     0   :  { %6 = vsyncpa [#allocation3], 0  ;;  %s595_s0 = inlined_call_operand.hbm [shape: f32[2,16,128], index: 0, kind: input, shape index: {}]   ;;  %s596_s1 = inlined_call_operand.hbm [shape: f32[2,16,128], index: 1, kind: output, shape index: {}]  }
   0x1   :  { %8 = vsyncpa [#allocation3 + $0x1], 0 }
   0x2   :  { %9 = vsyncpa [#allocation4], 0 }
   0x3   :  { %11 = vsyncpa [#allocation4 + $0x1], 0  ;;  %s433_s6 = smov 0   ;;  %s435_s7 = smov 0  }
   0x4   :  { %s437_s8 = smov 0   ;;  %s439_s9 = smov 0  }
   0x5 LB: > { %s454_s10 = sadd.s32 4294967295, %s415_s9   ;;  %s251_s11 = sadd.s32 4294967294, %s415_s9   ;;  %s415_s9 = sphi %s439_s9, %s609_s9   ;;  %s411_s8 = sphi %s437_s8, %s608_s8   ;;  %s407_s7 = sphi %s435_s7, %s607_s7   ;;  %s403_s6 = sphi %s433_s6, %s606_s6  }
   0x6   : > { %s458_s12 = sadd.s32 1, %s415_s9   ;;  %s24_s13 = sadd.s32 1, %s411_s8 }
   0x7   : > { %s21_s14 = ssub.s32 %s415_s9, %s458_s12  ;;  %p31_p0 = scmp.ne.s32.totalorder %s411_s8, %s407_s7 }
   0x8   : > { %p22_p1 = scmp.eq.s32.totalorder %s21_s14, 0  ;;  %p32_p2 = scmp.eq.s32.totalorder %s415_s9, 0 }
   0x9   : > { %p37_p3 = scmp.ne.s32.totalorder %s407_s7, %s403_s6  ;;  %p38_p4 = scmp.eq.s32.totalorder %s454_s10, 0 }
   0xa   : > { %s470_s15 = scalar_select %p22_p1, %s411_s8, %s24_s13  }
   0xb   : > { %p472_p5 = por %p32_p2, %p31_p0  ;;  %p476_p6 = por %p38_p4, %p37_p3 }
   0xc   : > { %p61_p7 = scmp.eq.s32.totalorder %s454_s10, 1  ;;  %p67_p8 = scmp.eq.s32.totalorder %s251_s11, 1 }
   0xd   : > { %p279_p10 = scmp.lt.s32.totalorder %s415_s9, 2  ;;  %s87_s20 = sand.u32 1, %s411_s8  }
   0xe   : > { %p483_p11 = por %p61_p7, %p31_p0  ;;  %p487_p12 = por %p67_p8, %p37_p3 }
   0xf   : > { %s265_s21 = sshll.u32 %s415_s9, 8  ;;  %s254_s22 = sshll.u32 %s87_s20, 4 }
  0x10   : > { %s600_s18 = scalar_select %p483_p11, 1, 0 }
  0x11   : > { %s601_s19 = scalar_select %p487_p12, 1, 0 }
  0x12   : > { %s496_s25 = scalar_lea.hbm %s595_s0, %s265_s21  ;;  %s91_s26 = scalar_lea.vmem [#allocation2], %s254_s22 }
  0x13   : > { %s98_s27 = sshll.u32 %s91_s26, 4  ;;  %p500_p13 = pnand %p279_p10, %p472_p5  ;;  %s504_s27 = int_to_ptr.vmem [resolvable:$true] %s98_s27 }
  0x14   : > { %s506_s29 = scalar_lea.sflag [#allocation3], %s87_s20  ;;  %s319_s30 = scalar_lea.hbm %s496_s25, 256 }
  0x15   : > { %p320_p0 = scmp.ne.s32.totalorder %s496_s25, %s319_s30  ;;  %p321_p1 = pneg %p500_p13 }
  0x16   : > { %s324_s4 = scalar_lea.hbm %s595_s0, 512  ;;  %p325_p4 = scmp.lt.u32.totalorder %s496_s25, %s595_s0 }
  0x17   : > { %p322_p2 = pnand %p321_p1, %p320_p0  ;;  %p326_p5 = scmp.lt.u32.totalorder %s324_s4, %s319_s30 }
  0x18   : > { %p328_p8 = scmp.lt.u32.totalorder %s319_s30, %s496_s25 }
  0x19   : > { %p323_p3 = pneg %p322_p2  ;;  %p327_p7 = por %p326_p5, %p325_p4 }
  0x1b   : > { %p329_p10 = por %p328_p8, %p327_p7 }
  0x1d   : > { %p330_p9 = pnand %p329_p10, %p323_p3 }
  0x1f   : > { %333 = shalt.err (!%p330_p9)
}
  0x20   : > { %s334_s13 = scalar_lea.vmem %s504_s27, 256  ;;  %s417_s14 = smov [#allocation2]  }
  0x21   : > { %p335_p0 = scmp.ne.s32.totalorder %s504_s27, %s334_s13  ;;  %s339_s16 = sshll.u32 %s417_s14, 4  ;;  %s340_s16 = int_to_ptr.vmem [resolvable:$false] %s339_s16 }
  0x22   : > { %s341_s20 = scalar_lea.vmem %s340_s16, 512  ;;  %p342_p11 = scmp.lt.s32.totalorder %s504_s27, %s340_s16 }
  0x23   : > { %p337_p2 = pnand %p335_p0, %p321_p1  ;;  %p343_p4 = scmp.lt.s32.totalorder %s341_s20, %s334_s13 }
  0x25   : > { %p338_p12 = pneg %p337_p2  ;;  %p344_p5 = por %p343_p4, %p342_p11 }
  0x27   : > { %p345_p7 = pnand %p344_p5, %p338_p12 }
  0x29   : > { %348 = shalt.err (!%p345_p7)
}
  0x2a   : > { %s418_s21 = smov 128   ;;  %s419_s22 = smov 8  }
  0x2b   : > { %274 = dma.hbm_to_vmem [thread:$0]  (!%p500_p13), %s496_s25, 256, %s504_s27, %s506_s29, %s418_s21, %s418_s21, %s419_s22  }
  0x2c   : > { %p257_p9 = scmp.ge.s32.totalorder %s415_s9, 1  ;;  %p106_p1 = scmp.lt.s32.totalorder %s415_s9, 3 }
  0x2e   : > { %p107_p3 = pnand %p257_p9, %p106_p1 }
  0x2f   : > { %s537_s23 = sand.u32 (!%p107_p3), 1, %s407_s7  }
  0x30   : > { %110 = sbr.rel (%p107_p3) target bundleno = 249 (0xf9), region = 24  ;;  %s258_s24 = sshll.u32 (!%p107_p3), %s537_s23, 4 }
  0x31   : > { %s113_s26 = scalar_lea.sflag (!%p107_p3), [#allocation3], %s537_s23  ;;  %s116_s30 = scalar_lea.vmem (!%p107_p3), [#allocation2], %s258_s24 }
  0x37   : > { %394 = dma.done.wait (%p476_p6), %s113_s26, 256  }
  0x38   : > { %396 = vsyncadd (%p476_p6), %s113_s26, 4294967040  ;;  %v135_v0 = vld [vmem:[%s116_s30] sm:$0xff]  ;;  %v136_v1 = vld [vmem:[%s116_s30 + $0x8] sm:$0xff]  ;;  %s266_s17 = sshll.u32 %s454_s10, 8  ;;  %s134_s25 = scalar_lea.vmem [#allocation5], %s258_s24 }
  0x39   : > { %v137_v2 = vmax.f32 %v135_v0, %v136_v1  ;;  %v146_v3 = vmin.f32 %v135_v0, %v136_v1  ;;  %s178_s27 = sshll.u32 %s134_s25, 4  ;;  %s549_s2 = scalar_lea.hbm %s596_s1, %s266_s17  ;;  %s551_s27 = int_to_ptr.vmem [resolvable:$true] %s178_s27 }
  0x3a   : > { %s165_s10 = scalar_lea.sflag [#allocation4], %s537_s23  ;;  %s349_s3 = scalar_lea.vmem %s551_s27, 256 }
  0x3b   : > { %138 = vmax.xlane.f32.xlu0 %v137_v2  ;;  %p350_p6 = scmp.ne.s32.totalorder %s551_s27, %s349_s3  ;;  %p603_p11 = scmp.ne.s32.totalorder %s600_s18, 0 }
  0x3c   : > { %s420_s4 = smov [#allocation5]  }
  0x3d   : > { %p351_p12 = pnand %p350_p6, %p603_p11  ;;  %s353_s5 = sshll.u32 %s420_s4, 4  ;;  %s354_s5 = int_to_ptr.vmem [resolvable:$false] %s353_s5 }
  0x3e   : > { %s355_s11 = scalar_lea.vmem %s354_s5, 512  ;;  %p356_p8 = scmp.lt.s32.totalorder %s551_s27, %s354_s5 }
  0x3f   : > { %147 = vmin.xlane.f32.xlu0 %v146_v3  ;;  %p352_p13 = pneg %p351_p12  ;;  %p357_p10 = scmp.lt.s32.totalorder %s355_s11, %s349_s3 }
  0x41   : > { %p358_p0 = por %p357_p10, %p356_p8 }
  0x43   : > { %p359_p2 = pnand %p358_p0, %p352_p13 }
  0xc8   : > { %v139_v4 = vpop.xlane.xlu0 %138 }
  0xc9   : > { %v140_v5 = vrot.slane %v139_v4, 4 }
  0xcb   : > { %v141_v6 = vmax.f32 %v139_v4, %v140_v5 }
  0xcc   : > { %v148_v7 = vpop.xlane.xlu0 %147 }
  0xcd   : > { %v142_v8 = vrot.slane %v141_v6, 2  ;;  %v149_v9 = vrot.slane %v148_v7, 4 }
  0xcf   : > { %v143_v10 = vmax.f32 %v141_v6, %v142_v8  ;;  %v150_v11 = vmin.f32 %v148_v7, %v149_v9 }
  0xd1   : > { %v151_v12 = vrot.slane %v150_v11, 2  ;;  %v144_v13 = vrot.slane %v143_v10, 1 }
  0xd3   : > { %v152_v14 = vmin.f32 %v150_v11, %v151_v12  ;;  %v145_v16 = vmax.f32 %v143_v10, %v144_v13 }
  0xd5   : > { %v153_v15 = vrot.slane %v152_v14, 1  ;;  %v158_v20 = vsub.f32 %v135_v0, %v145_v16  ;;  %v159_v21 = vsub.f32 %v136_v1, %v145_v16 }
  0xd7   : > { %v154_v17 = vmin.f32 %v152_v14, %v153_v15 }
  0xd9   : > { %v155_v18 = vsub.f32 %v154_v17, %v145_v16 }
  0xdb   : > { %v156_v19 = vadd.f32 1e-06, %v155_v18 }
  0xdd   : > { %317 = vrcp.f32 %v156_v19 }
  0xe7   : > { %v318_v22 = vpop.eup %317 }
  0xe8   : > { %v160_v23 = vmul.f32 %v318_v22, %v158_v20  ;;  %v161_v24 = vmul.f32 %v318_v22, %v159_v21 }
  0xea   : > { %162 = vst [vmem:[%s134_s25] sm:$0xff] %v160_v23  ;;  %163 = vst [vmem:[%s134_s25 + $0x8] sm:$0xff] %v161_v24 }
  0xeb   : > { %362 = shalt.err (!%p359_p2)
}
  0xec   : > { %s363_s13 = scalar_lea.hbm %s549_s2, 256  ;;  %s367_s20 = scalar_lea.hbm %s596_s1, 512 }
  0xed   : > { %p364_p4 = scmp.ne.s32.totalorder %s549_s2, %s363_s13  ;;  %p368_p9 = scmp.lt.u32.totalorder %s549_s2, %s596_s1 }
  0xee   : > { %p369_p1 = scmp.lt.u32.totalorder %s367_s20, %s363_s13  ;;  %p371_p6 = scmp.lt.u32.totalorder %s363_s13, %s549_s2 }
  0xef   : > { %p365_p5 = pnand %p364_p4, %p603_p11 }
  0xf0   : > { %p370_p3 = por %p369_p1, %p368_p9 }
  0xf1   : > { %p366_p7 = pneg %p365_p5 }
  0xf2   : > { %p372_p12 = por %p371_p6, %p370_p3 }
  0xf4   : > { %p373_p13 = pnand %p372_p12, %p366_p7 }
  0xf6   : > { %376 = shalt.err (!%p373_p13)
}
  0xf7   : > { %s421_s24 = smov 128   ;;  %s422_s26 = smov 8  }
  0xf8   : > { %269 = dma.vmem_to_hbm [thread:$0]  (%p603_p11), %s551_s27, 256, %s549_s2, %s165_s10, %s421_s24, %s421_s24, %s422_s26  }
  0xf9 PF: > { %s193_s30 = sand.u32 1, %s403_s6   ;;  %p604_p8 = scmp.ne.s32.totalorder %s601_s19, 0 }
  0xfa   : > { %p605_p10 = scmp.ge.s32.totalorder %s415_s9, 2  ;;  %s194_s17 = scalar_lea.sflag [#allocation4], %s193_s30 }
  0xfc   : > { %p276_p0 = pnand %p605_p10, %p604_p8 }
  0xfe   : > { %398 = dma.done.wait (!%p276_p0), %s194_s17, 256  }
  0xff   : > { %400 = vsyncadd (!%p276_p0), %s194_s17, 4294967040  ;;  %p14_p2 = scmp.ge.s32.totalorder %s458_s12, 4   ;;  %s606_s6 = smov %s407_s7 }
 0x100   : > { %s607_s7 = smov %s411_s8  ;;  %s608_s8 = smov %s470_s15 }
 0x101   : > { %s609_s9 = smov %s458_s12  ;;  %16 = sbr.rel (!%p14_p2) target bundleno = 5 (0x5), region = 69 }
 0x108   :  { %199 = vsyncpa [#allocation3], 1 }
 0x109   :  { %201 = vsyncpa [#allocation3 + $0x1], 1 }
 0x10a   :  { %202 = vsyncpa [#allocation4], 1 }
 0x10b   :  { %204 = vsyncpa [#allocation4 + $0x1], 1 }

</bundles_post_ra>
